<compile_context>
chip_gen: v7x
topology: tpu7x:2x2x1
jax: 0.10.0
libtpu: 0.0.40
codegen_flags: <defaults>
</compile_context>

<pallas_src>
import jax
import jax.numpy as jnp
from jax.experimental import pallas as pl
from jax.experimental.pallas import tpu as pltpu


def protonet_kernel(x_ref, w_enc_ref, b_enc_ref, w_fc2_ref, b_fc2_ref, out_ref):
    # Encoder: Linear(input -> hidden) + ReLU.  bf16 x bf16 -> f32 on the MXU.
    h = jnp.dot(x_ref[...], w_enc_ref[...], preferred_element_type=jnp.float32)
    h = jnp.maximum(h + b_enc_ref[...], 0.0)           # bias + ReLU on the VPU
    # fc2: Linear(hidden -> output_padded).  Re-cast activations to bf16 for
    # the second MXU pass; accumulate in f32.
    y = jnp.dot(h.astype(w_fc2_ref.dtype), w_fc2_ref[...],
                preferred_element_type=jnp.float32)
    out_ref[...] = (y + b_fc2_ref[...]).astype(out_ref.dtype)


def _round_up(n, m):
    return ((n + m - 1) // m) * m


def protonet_forward(x, w_enc, b_enc, w_fc2, b_fc2, *, tile_m=None):
    """x: [B, input_size]; w_enc: [input_size, hidden]; w_fc2: [hidden, output].

    Weights are stored pre-transposed ([in, out]) so the kernel does plain
    row-major matmuls.  Returns f32 [B, output].
    """
    B, in_dim = x.shape
    hidden = w_enc.shape[1]
    out_dim = w_fc2.shape[1]

    # ---- batch tile: whole batch in one step when small, 256-row MXU-aligned
    #      tiles when large (keeps >=2 grid steps for the two v7x TensorCores).
    if tile_m is None:
        tile_m = 256 if B > 256 else _round_up(B, 8)
    tile_m = _round_up(tile_m, 8)
    b_pad = _round_up(B, tile_m)

    # ---- lane-dense output: pad the (possibly narrow) output dim to 128 lanes
    #      so output writes are full, unmasked vector stores.
    out_pad = _round_up(out_dim, 128)

    # ---- bf16 operands for the MXU; biases stay f32 (added post-accumulation).
    x_p = jnp.zeros((b_pad, in_dim), jnp.bfloat16).at[:B].set(
        x.astype(jnp.bfloat16))
    w_enc_b = w_enc.astype(jnp.bfloat16)
    b_enc_f = b_enc.reshape(1, hidden).astype(jnp.float32)
    w_fc2_b = jnp.zeros((hidden, out_pad), jnp.bfloat16).at[:, :out_dim].set(
        w_fc2.astype(jnp.bfloat16))
    b_fc2_f = jnp.zeros((1, out_pad), jnp.float32).at[:, :out_dim].set(
        b_fc2.reshape(1, out_dim).astype(jnp.float32))

    grid = (b_pad // tile_m,)

    flops = 2 * b_pad * (in_dim * hidden + hidden * out_pad)
    bytes_accessed = (x_p.size * 2 + w_enc_b.size * 2 + w_fc2_b.size * 2
                      + b_enc_f.size * 4 + b_fc2_f.size * 4
                      + b_pad * out_pad * 4)

    out_padded = pl.pallas_call(
        protonet_kernel,
        out_shape=jax.ShapeDtypeStruct((b_pad, out_pad), jnp.float32),
        grid_spec=pltpu.PrefetchScalarGridSpec(
            num_scalar_prefetch=0,
            grid=grid,
            in_specs=[
                # x: tiled over the batch axis.
                pl.BlockSpec((tile_m, in_dim), lambda i: (i, 0)),
                # Weights / biases: full blocks, grid-invariant -> VMEM-resident.
                pl.BlockSpec((in_dim, hidden), lambda i: (0, 0)),
                pl.BlockSpec((1, hidden), lambda i: (0, 0)),
                pl.BlockSpec((hidden, out_pad), lambda i: (0, 0)),
                pl.BlockSpec((1, out_pad), lambda i: (0, 0)),
            ],
            out_specs=pl.BlockSpec((tile_m, out_pad), lambda i: (i, 0)),
        ),
        compiler_params=pltpu.CompilerParams(
            dimension_semantics=("parallel",),
            vmem_limit_bytes=64 * 1024 * 1024,
        ),
        cost_estimate=pl.CostEstimate(
            flops=flops, transcendentals=0, bytes_accessed=bytes_accessed),
    )(x_p, w_enc_b, b_enc_f, w_fc2_b, b_fc2_f)

    # Strip batch / lane padding.
    return out_padded[:B, :out_dim]


def init_params(key, input_size, hidden_size, output_size, dtype=jnp.float32):
    """Deterministic synthetic parameters (PyTorch-Linear-like scaling)."""
    k1, k2, k3, k4 = jax.random.split(key, 4)
    s_enc = 1.0 / jnp.sqrt(input_size)
    s_fc2 = 1.0 / jnp.sqrt(hidden_size)
    # Stored pre-transposed: [in, out]  (PyTorch stores [out, in], does x @ W.T)
    w_enc = (jax.random.uniform(k1, (input_size, hidden_size), dtype,
                                minval=-1.0, maxval=1.0) * s_enc)
    b_enc = (jax.random.uniform(k2, (1, hidden_size), dtype,
                                minval=-1.0, maxval=1.0) * s_enc)
    w_fc2 = (jax.random.uniform(k3, (hidden_size, output_size), dtype,
                                minval=-1.0, maxval=1.0) * s_fc2)
    b_fc2 = (jax.random.uniform(k4, (1, output_size), dtype,
                                minval=-1.0, maxval=1.0) * s_fc2)
    return w_enc, b_enc, w_fc2, b_fc2


def _reference(x, w_enc, b_enc, w_fc2, b_fc2):
    return jnp.maximum(x @ w_enc + b_enc, 0.0) @ w_fc2 + b_fc2


if __name__ == "__main__":
    key = jax.random.PRNGKey(0)

    input_size = 64
    hidden_size = 128   # ProtoNet default hidden_size
    output_size = 32

    kx1, kx2, kp = jax.random.split(key, 3)
    w_enc, b_enc, w_fc2, b_fc2 = init_params(kp, input_size, hidden_size,
                                             output_size)

    # Case 1: nice small batch (single grid step, whole batch in one tile).
    x1 = jax.random.normal(kx1, (16, input_size), jnp.float32)
    out1 = jax.block_until_ready(protonet_forward(x1, w_enc, b_enc, w_fc2, b_fc2))
    ref1 = _reference(x1, w_enc, b_enc, w_fc2, b_fc2)
    assert out1.shape == (16, output_size)
    # bf16 operands with f32 accumulation -> loose tolerance vs f32 reference.
    assert jnp.allclose(out1, ref1, atol=3e-2, rtol=3e-2), "kernel mismatch (case 1)"

    # Case 2: batch not a multiple of the sublane width (exercises padding).
    x2 = jax.random.normal(kx2, (20, input_size), jnp.float32)
    out2 = jax.block_until_ready(protonet_forward(x2, w_enc, b_enc, w_fc2, b_fc2))
    ref2 = _reference(x2, w_enc, b_enc, w_fc2, b_fc2)
    assert out2.shape == (20, output_size)
    assert jnp.allclose(out2, ref2, atol=3e-2, rtol=3e-2), "kernel mismatch (case 2)"

    print("KERNEL_OK")
</pallas_src>

<mosaic_0001>
module attributes {stable_mosaic.version = 11 : i64} {
  func.func @protonet_kernel(%arg0: i32, %arg1: memref<16x64xbf16, #tpu.memory_space<vmem>>, %arg2: memref<64x128xbf16, #tpu.memory_space<vmem>>, %arg3: memref<1x128xf32, #tpu.memory_space<vmem>>, %arg4: memref<128x128xbf16, #tpu.memory_space<vmem>>, %arg5: memref<1x128xf32, #tpu.memory_space<vmem>>, %arg6: memref<16x128xf32, #tpu.memory_space<vmem>>) attributes {dimension_semantics = [#tpu.dimension_semantics<parallel>], iteration_bounds = array<i64: 1>, scalar_prefetch = 0 : i64, scratch_operands = 0 : i64, tpu.core_type = #tpu.core_type<tc>, window_params = [{transform_indices = @transform_0, window_bounds = array<i64: 16, 64>}, {pipeline_mode = #tpu.pipeline_mode<synchronous>, transform_indices = @transform_1, window_bounds = array<i64: 64, 128>}, {pipeline_mode = #tpu.pipeline_mode<synchronous>, transform_indices = @transform_2, window_bounds = array<i64: 1, 128>}, {pipeline_mode = #tpu.pipeline_mode<synchronous>, transform_indices = @transform_3, window_bounds = array<i64: 128, 128>}, {pipeline_mode = #tpu.pipeline_mode<synchronous>, transform_indices = @transform_4, window_bounds = array<i64: 1, 128>}, {transform_indices = @transform_5, window_bounds = array<i64: 16, 128>}]} {
    %c0 = arith.constant 0 : index
    %c0_0 = arith.constant 0 : index
    %0 = vector.load %arg1[%c0, %c0_0] : memref<16x64xbf16, #tpu.memory_space<vmem>>, vector<16x64xbf16>
    %c0_1 = arith.constant 0 : index
    %c0_2 = arith.constant 0 : index
    %1 = vector.load %arg2[%c0_1, %c0_2] : memref<64x128xbf16, #tpu.memory_space<vmem>>, vector<64x128xbf16>
    %cst = arith.constant dense<0.000000e+00> : vector<16x128xf32>
    %2 = tpu.matmul %0, %1, %cst {dimension_numbers = #tpu.dot_dimension_numbers<[1], [0], [0], [1], [0, 0, 1, 1], [], []>} : vector<16x64xbf16>, vector<64x128xbf16>, vector<16x128xf32> -> vector<16x128xf32>
    %c0_3 = arith.constant 0 : index
    %c0_4 = arith.constant 0 : index
    %3 = vector.load %arg3[%c0_3, %c0_4] : memref<1x128xf32, #tpu.memory_space<vmem>>, vector<1x128xf32>
    %4 = vector.broadcast %3 : vector<1x128xf32> to vector<16x128xf32>
    %5 = arith.addf %2, %4 : vector<16x128xf32>
    %cst_5 = arith.constant 0.000000e+00 : f32
    %6 = vector.broadcast %cst_5 : f32 to vector<16x128xf32>
    %7 = arith.maximumf %5, %6 : vector<16x128xf32>
    %8 = arith.truncf %7 : vector<16x128xf32> to vector<16x128xbf16>
    %c0_6 = arith.constant 0 : index
    %c0_7 = arith.constant 0 : index
    %9 = vector.load %arg4[%c0_6, %c0_7] : memref<128x128xbf16, #tpu.memory_space<vmem>>, vector<128x128xbf16>
    %cst_8 = arith.constant dense<0.000000e+00> : vector<16x128xf32>
    %10 = tpu.matmul %8, %9, %cst_8 {dimension_numbers = #tpu.dot_dimension_numbers<[1], [0], [0], [1], [0, 0, 1, 1], [], []>} : vector<16x128xbf16>, vector<128x128xbf16>, vector<16x128xf32> -> vector<16x128xf32>
    %c0_9 = arith.constant 0 : index
    %c0_10 = arith.constant 0 : index
    %11 = vector.load %arg5[%c0_9, %c0_10] : memref<1x128xf32, #tpu.memory_space<vmem>>, vector<1x128xf32>
    %12 = vector.broadcast %11 : vector<1x128xf32> to vector<16x128xf32>
    %13 = arith.addf %10, %12 : vector<16x128xf32>
    %c0_11 = arith.constant 0 : index
    %c0_12 = arith.constant 0 : index
    %14 = vector.load %arg6[%c0_11, %c0_12] : memref<16x128xf32, #tpu.memory_space<vmem>>, vector<16x128xf32>
    tpu.vector_store %arg6[%c0_11, %c0_12], %13 {strides = array<i32>} : memref<16x128xf32, #tpu.memory_space<vmem>>, vector<16x128xf32>,
    return
  }
  func.func @transform_0(%arg0: i32) -> (i32, i32) {
    %c0_i32 = arith.constant 0 : i32
    %c0_i32_0 = arith.constant 0 : i32
    return %arg0, %c0_i32 : i32, i32
  }
  func.func @transform_1(%arg0: i32) -> (i32, i32) {
    %c0_i32 = arith.constant 0 : i32
    %c0_i32_0 = arith.constant 0 : i32
    %c0_i32_1 = arith.constant 0 : i32
    return %c0_i32, %c0_i32_0 : i32, i32
  }
  func.func @transform_2(%arg0: i32) -> (i32, i32) {
    %c0_i32 = arith.constant 0 : i32
    %c0_i32_0 = arith.constant 0 : i32
    %c0_i32_1 = arith.constant 0 : i32
    return %c0_i32, %c0_i32_0 : i32, i32
  }
  func.func @transform_3(%arg0: i32) -> (i32, i32) {
    %c0_i32 = arith.constant 0 : i32
    %c0_i32_0 = arith.constant 0 : i32
    %c0_i32_1 = arith.constant 0 : i32
    return %c0_i32, %c0_i32_0 : i32, i32
  }
  func.func @transform_4(%arg0: i32) -> (i32, i32) {
    %c0_i32 = arith.constant 0 : i32
    %c0_i32_0 = arith.constant 0 : i32
    %c0_i32_1 = arith.constant 0 : i32
    return %c0_i32, %c0_i32_0 : i32, i32
  }
  func.func @transform_5(%arg0: i32) -> (i32, i32) {
    %c0_i32 = arith.constant 0 : i32
    %c0_i32_0 = arith.constant 0 : i32
    return %arg0, %c0_i32 : i32, i32
  }
}

</mosaic_0001>

<bundles_post_ra>
// kernel: tpu_custom_call.1
= control target key start
LH: loop header
LB: loop body
LE: loop exit
PB: predicated region body
PF: predicated region fallthrough
CT: control target
= control target key end

     0   :  { %10 = vsyncpa [#allocation3], 0  ;;  %s670_s0 = inlined_call_operand.hbm [shape: bf16[16,64], index: 0, kind: input, shape index: {}]   ;;  %s671_s1 = inlined_call_operand.hbm [shape: bf16[64,128], index: 1, kind: input, shape index: {}]   ;;  %s672_s2 = inlined_call_operand.hbm [shape: f32[1,128], index: 2, kind: input, shape index: {}]   ;;  %s673_s3 = inlined_call_operand.hbm [shape: bf16[128,128], index: 3, kind: input, shape index: {}]   ;;  %s674_s4 = inlined_call_operand.hbm [shape: f32[1,128], index: 4, kind: input, shape index: {}]   ;;  %s675_s5 = inlined_call_operand.hbm [shape: f32[16,128], index: 5, kind: output, shape index: {}]  }
   0x1   :  { %11 = vsyncpa [#allocation6], 0 }
   0x2   :  { %12 = vsyncpa [#allocation9], 0 }
   0x3   :  { %13 = vsyncpa [#allocation4], 0  ;;  %s540_s18 = smov [#allocation5]   ;;  %s541_s20 = smov [#allocation8]  }
   0x4   :  { %s31_s19 = sshll.u32 %s540_s18, 4  ;;  %s53_s21 = sshll.u32 %s541_s20, 4  ;;  %s32_s19 = int_to_ptr.vmem [resolvable:$true] %s31_s19  ;;  %s582_s21 = int_to_ptr.vmem [resolvable:$true] %s53_s21 }
   0x5   :  { %s400_s24 = scalar_lea.hbm %s671_s1, 512 }
   0x6   :  { %p401_p0 = scmp.ne.s32.totalorder %s671_s1, %s400_s24  ;;  %p404_p1 = scmp.lt.u32.totalorder %s400_s24, %s671_s1 }
   0x8   :  { %p406_p2 = pnand %p404_p1, %p401_p0 }
   0xa   :  { %409 = shalt.err (!%p406_p2)
}
   0xb   :  { %s410_s29 = scalar_lea.vmem %s32_s19, 512  ;;  %p415_p4 = scmp.lt.s32.totalorder %s32_s19, %s32_s19 }
   0xc   :  { %p411_p3 = scmp.ne.s32.totalorder %s32_s19, %s410_s29  ;;  %p416_p5 = scmp.lt.s32.totalorder %s410_s29, %s410_s29 }
   0xe   :  { %p417_p6 = por %p416_p5, %p415_p4 }
  0x10   :  { %p418_p7 = pnand %p417_p6, %p411_p3 }
  0x12   :  { %421 = shalt.err (!%p418_p7)
}
  0x13   :  { %s542_s30 = smov 64   ;;  %s543_s6 = smov 4  }
  0x14   :  { %37 = dma.hbm_to_vmem [thread:$0]  %s671_s1, 512, %s32_s19, [#allocation6], %s542_s30, %s542_s30, %s543_s6  }
  0x15   :  { %s422_s11 = scalar_lea.hbm %s673_s3, 1024 }
  0x16   :  { %p423_p8 = scmp.ne.s32.totalorder %s673_s3, %s422_s11  ;;  %p426_p9 = scmp.lt.u32.totalorder %s422_s11, %s673_s3 }
  0x18   :  { %p428_p10 = pnand %p426_p9, %p423_p8 }
  0x1a   :  { %431 = shalt.err (!%p428_p10)
}
  0x1b   :  { %s432_s16 = scalar_lea.vmem %s582_s21, 1024  ;;  %p437_p12 = scmp.lt.s32.totalorder %s582_s21, %s582_s21 }
  0x1c   :  { %p433_p11 = scmp.ne.s32.totalorder %s582_s21, %s432_s16  ;;  %p438_p13 = scmp.lt.s32.totalorder %s432_s16, %s432_s16 }
  0x1e   :  { %p439_p0 = por %p438_p13, %p437_p12 }
  0x20   :  { %p440_p1 = pnand %p439_p0, %p433_p11 }
  0x22   :  { %443 = shalt.err (!%p440_p1)
}
  0x23   :  { %59 = dma.hbm_to_vmem [thread:$0]  %s673_s3, 1024, %s582_s21, [#allocation9], %s542_s30, %s542_s30, %s543_s6  }
  0x24   :  { %s544_s18 = smov [#allocation2]   ;;  %s545_s20 = smov [#allocation7]  }
  0x25   :  { %s19_s19 = sshll.u32 %s544_s18, 4  ;;  %s44_s22 = sshll.u32 %s545_s20, 4  ;;  %s20_s19 = int_to_ptr.vmem [resolvable:$true] %s19_s19  ;;  %s45_s22 = int_to_ptr.vmem [resolvable:$true] %s44_s22 }
  0x26   :  { %s444_s25 = scalar_lea.hbm %s670_s0, 128 }
  0x27   :  { %p445_p2 = scmp.ne.s32.totalorder %s670_s0, %s444_s25  ;;  %p448_p3 = scmp.lt.u32.totalorder %s444_s25, %s670_s0 }
  0x29   :  { %p450_p4 = pnand %p448_p3, %p445_p2 }
  0x2b   :  { %453 = shalt.err (!%p450_p4)
}
  0x2c   :  { %s454_s3 = scalar_lea.vmem %s20_s19, 128  ;;  %p459_p6 = scmp.lt.s32.totalorder %s20_s19, %s20_s19 }
  0x2d   :  { %p455_p5 = scmp.ne.s32.totalorder %s20_s19, %s454_s3  ;;  %p460_p7 = scmp.lt.s32.totalorder %s454_s3, %s454_s3 }
  0x2f   :  { %p461_p8 = por %p460_p7, %p459_p6 }
  0x31   :  { %p462_p9 = pnand %p461_p8, %p455_p5 }
  0x33   :  { %465 = shalt.err (!%p462_p9)
}
  0x34   :  { %25 = dma.hbm_to_vmem [thread:$0]  %s670_s0, 128, %s20_s19, [#allocation3], %s542_s30, %s542_s30, %s543_s6  }
  0x35   :  { %s466_s10 = scalar_lea.hbm %s672_s2, 16 }
  0x36   :  { %p467_p10 = scmp.ne.s32.totalorder %s672_s2, %s466_s10  ;;  %p470_p11 = scmp.lt.u32.totalorder %s466_s10, %s672_s2 }
  0x38   :  { %p472_p12 = pnand %p470_p11, %p467_p10 }
  0x3a   :  { %475 = shalt.err (!%p472_p12)
}
  0x3b   :  { %s476_s15 = scalar_lea.vmem %s45_s22, 16  ;;  %s480_s16 = scalar_lea.vmem %s45_s22, 32 }
  0x3c   :  { %p477_p13 = scmp.ne.s32.totalorder %s45_s22, %s476_s15  ;;  %p481_p0 = scmp.lt.s32.totalorder %s45_s22, %s45_s22 }
  0x3d   :  { %p482_p1 = scmp.lt.s32.totalorder %s480_s16, %s476_s15 }
  0x3f   :  { %p483_p2 = por %p482_p1, %p481_p0 }
  0x41   :  { %p484_p3 = pnand %p483_p2, %p477_p13 }
  0x43   :  { %487 = shalt.err (!%p484_p3)
}
  0x44   :  { %47 = dma.hbm_to_vmem [thread:$0]  %s672_s2, 16, %s45_s22, [#allocation6]  }
  0x45   :  { %s546_s6 = smov [#allocation10]   ;;  %s488_s19 = scalar_lea.hbm %s674_s4, 16 }
  0x46   :  { %s66_s1 = sshll.u32 %s546_s6, 4  ;;  %p489_p4 = scmp.ne.s32.totalorder %s674_s4, %s488_s19  ;;  %s67_s1 = int_to_ptr.vmem [resolvable:$true] %s66_s1 }
  0x47   :  { %p492_p5 = scmp.lt.u32.totalorder %s488_s19, %s674_s4 }
  0x49   :  { %p494_p6 = pnand %p492_p5, %p489_p4 }
  0x4b   :  { %497 = shalt.err (!%p494_p6)
}
  0x4c   :  { %s498_s26 = scalar_lea.vmem %s67_s1, 16  ;;  %s502_s2 = scalar_lea.vmem %s67_s1, 32 }
  0x4d   :  { %p499_p7 = scmp.ne.s32.totalorder %s67_s1, %s498_s26  ;;  %p503_p8 = scmp.lt.s32.totalorder %s67_s1, %s67_s1 }
  0x4e   :  { %p504_p9 = scmp.lt.s32.totalorder %s502_s2, %s498_s26 }
  0x50   :  { %p505_p10 = por %p504_p9, %p503_p8 }
  0x52   :  { %p506_p11 = pnand %p505_p10, %p499_p7 }
  0x54   :  { %509 = shalt.err (!%p506_p11)
}
  0x55   :  { %69 = dma.hbm_to_vmem [thread:$0]  %s674_s4, 16, %s67_s1, [#allocation9]  }
  0x56   :  { %532 = dma.done.wait [#allocation3], 128  }
  0x57   :  { %533 = vsyncadd [#allocation3], 4294967168 }
  0x58   :  { %534 = dma.done.wait [#allocation6], 528  }
  0x59   :  { %535 = vsyncadd [#allocation6], 4294966768 }
  0x5a   :  { %536 = dma.done.wait [#allocation9], 1040  }
  0x5b   :  { %537 = vsyncadd [#allocation9], 4294966256  ;;  %v547_v0 = vmov 0.0   ;;  %vm548_vm0 = vmmov 0   ;;  %v387_v1 = vld [vmem:[#allocation5] sm:$0xff]   ;;  %v388_v2 = vld [vmem:[#allocation5 + $0x8] sm:$0xff]  }
  0x5c   :  { %343 = vmatprep.subr.bf16.mxu0 %v547_v0  ;;  %351 = vmatprep.mubr.msk.bf16.mxu0 %vm548_vm0, %v547_v0  ;;  %v392_v3 = vld [vmem:[#allocation8] sm:$0xff]   ;;  %v389_v4 = vld [vmem:[#allocation5 + $0x10] sm:$0xff]   ;;  %v390_v6 = vld [vmem:[#allocation5 + $0x18] sm:$0xff]   ;;  %vm132_vm1 = vcmask 523264   ;;  %s549_s4 = smov [#allocation11]  }
  0x5d   :  { %355 = vmatprep.subr.bf16.mxu1 %v547_v0  ;;  %371 = vmatprep.mubr.msk.bf16.mxu1 %vm548_vm0, %v547_v0  ;;  %v393_v5 = vld [vmem:[#allocation8 + $0x8] sm:$0xff]   ;;  %v394_v7 = vld [vmem:[#allocation8 + $0x10] sm:$0xff]   ;;  %v395_v9 = vld [vmem:[#allocation8 + $0x18] sm:$0xff]   ;;  %s299_s28 = sshll.u32 %s549_s4, 4  ;;  %s300_s28 = int_to_ptr.vmem [resolvable:$true] %s299_s28 }
  0x5e   :  { %344 = vmatpush3.bf16.msra.mxu0 %v387_v1  ;;  %356 = vmatpush3.bf16.msra.mxu1 %v392_v3  ;;  %v391_v8 = vld [vmem:[#allocation2] sm:$0xff]   ;;  %v396_v10 = vld [vmem:[#allocation8 + $0x20] sm:$0xff]   ;;  %v397_v11 = vld [vmem:[#allocation8 + $0x28] sm:$0xff]   ;;  %s510_s29 = scalar_lea.vmem %s300_s28, 256  ;;  %p515_p13 = scmp.lt.s32.totalorder %s300_s28, %s300_s28 }
  0x5f   :  { %345 = vmatprep.subr.bf16.mxu0 %v547_v0  ;;  %357 = vmatprep.subr.bf16.mxu1 %v547_v0  ;;  %v398_v12 = vld [vmem:[#allocation8 + $0x30] sm:$0xff]   ;;  %v399_v13 = vld [vmem:[#allocation8 + $0x38] sm:$0xff]   ;;  %v320_v24 = vld [vmem:[#allocation10] ss:$0 sm:$0xff]  ;;  %p511_p12 = scmp.ne.s32.totalorder %s300_s28, %s510_s29  ;;  %p516_p0 = scmp.lt.s32.totalorder %s510_s29, %s510_s29 }
  0x60   :  { %v313_v14 = vld [vmem:[#allocation7] ss:$0 sm:$0xff] }
  0x61   :  { %p517_p1 = por %p516_p0, %p515_p13 }
  0x62   :  { %346 = vmatpush3.bf16.msra.mxu0 %v388_v2  ;;  %358 = vmatpush3.bf16.msra.mxu1 %v393_v5 }
  0x63   :  { %347 = vmatprep.subr.bf16.mxu0 %v547_v0  ;;  %359 = vmatprep.subr.bf16.mxu1 %v547_v0  ;;  %p518_p2 = pnand %p517_p1, %p511_p12 }
  0x66   :  { %348 = vmatpush3.bf16.msra.mxu0 %v389_v4  ;;  %360 = vmatpush3.bf16.msra.mxu1 %v394_v7 }
  0x67   :  { %349 = vmatprep.subr.bf16.mxu0 %v547_v0  ;;  %361 = vmatprep.subr.bf16.mxu1 %v547_v0 }
  0x6a   :  { %350 = vmatpush3.bf16.msra.mxu0 %v390_v6  ;;  %362 = vmatpush3.bf16.msra.mxu1 %v395_v9 }
  0x6b   :  { %363 = vmatprep.subr.bf16.mxu1 %v547_v0 }
  0x6d   :  { %352 = vmatmul.mubr.msk.bf16.vlgmr.msra.gmra.mrb[0].mxu0 %vm132_vm1, %v391_v8 }
  0x6e   :  { %364 = vmatpush3.bf16.msra.mxu1 %v396_v10 }
  0x6f   :  { %365 = vmatprep.subr.bf16.mxu1 %v547_v0 }
  0x72   :  { %366 = vmatpush3.bf16.msra.mxu1 %v397_v11 }
  0x73   :  { %367 = vmatprep.subr.bf16.mxu1 %v547_v0 }
  0x76   :  { %368 = vmatpush3.bf16.msra.mxu1 %v398_v12 }
  0x77   :  { %369 = vmatprep.subr.bf16.mxu1 %v547_v0 }
  0x7a   :  { %370 = vmatpush3.bf16.msra.mxu1 %v399_v13 }
 0x140   :  { %v170_v15 = vpop.f32.mrb[0].mxu0 }
 0x141   :  { %v171_v16 = vadd.f32 %v313_v14, %v170_v15  ;;  %v353_v17 = vpop.f32.mrb[1].mxu0 }
 0x142   :  { %v173_v18 = vpop.f32.mrb[2].mxu0 }
 0x143   :  { %v174_v19 = vadd.f32 %v313_v14, %v173_v18  ;;  %v354_v20 = vpop.f32.mrb[3].mxu0  ;;  %v177_v21 = vmax.f32 %v171_v16, 0.0 }
 0x145   :  { %v178_v22 = vmax.f32 %v174_v19, 0.0 }
 0x147   :  { %v179_v23 = vpack.c.bf16 %v178_v22, %v177_v21 }
 0x149   :  { %372 = vmatmul.mubr.bf16.vlgmr.msra.gmra.mrb[0].mxu1 %v179_v23 }
 0x21c   :  { %v285_v25 = vpop.f32.mrb[0].mxu1 }
 0x21d   :  { %v286_v26 = vadd.f32 %v320_v24, %v285_v25  ;;  %v373_v27 = vpop.f32.mrb[1].mxu1 }
 0x21e   :  { %v288_v28 = vpop.f32.mrb[2].mxu1 }
 0x21f   :  { %292 = vst [vmem:[#allocation11] sm:$0xff] %v286_v26  ;;  %v289_v29 = vadd.f32 %v320_v24, %v288_v28  ;;  %v374_v30 = vpop.f32.mrb[3].mxu1 }
 0x221   :  { %293 = vst [vmem:[#allocation11 + $0x8] sm:$0xff] %v289_v29 }
 0x222   :  { %521 = shalt.err (!%p518_p2)
}
 0x223   :  { %s522_s7 = scalar_lea.hbm %s675_s5, 256 }
 0x224   :  { %p523_p3 = scmp.ne.s32.totalorder %s675_s5, %s522_s7  ;;  %p526_p4 = scmp.lt.u32.totalorder %s522_s7, %s675_s5 }
 0x226   :  { %p528_p5 = pnand %p526_p4, %p523_p3 }
 0x228   :  { %531 = shalt.err (!%p528_p5)
}
 0x229   :  { %s550_s12 = smov 128   ;;  %s551_s13 = smov 8  }
 0x22a   :  { %305 = dma.vmem_to_hbm [thread:$0]  %s300_s28, 256, %s675_s5, [#allocation4], %s550_s12, %s550_s12, %s551_s13  }
 0x22b   :  { %538 = dma.done.wait [#allocation4], 256  }
 0x22c   :  { %539 = vsyncadd [#allocation4], 4294967040 }
 0x22d   :  { %309 = vsyncpa [#allocation3], 1 }
 0x22e   :  { %310 = vsyncpa [#allocation6], 1 }
 0x22f   :  { %311 = vsyncpa [#allocation9], 1 }
 0x230   :  { %312 = vsyncpa [#allocation4], 1 }

</bundles_post_ra>
